<compile_context>
chip_gen: v7x
topology: tpu7x:2x2x1
jax: 0.10.0
libtpu: 0.0.40
codegen_flags: <defaults>
</compile_context>

<pallas_src>
import functools

import numpy as np

import jax
import jax.numpy as jnp
from jax.experimental import pallas as pl
from jax.experimental.pallas import tpu as pltpu


def _round_up(x: int, m: int) -> int:
    return -(-x // m) * m


def _packing(n: int):
    """Return (pack, n_out): signals per 128-lane row and padded output width."""
    if n <= 128 and 128 % n == 0:
        return 128 // n, n
    # pack == 1 path: pad the *output* columns to a multiple of 128 so the
    # stores are lane-dense; valid columns are sliced in the fused wrapper.
    return 1, _round_up(n, 128)


@functools.lru_cache(maxsize=None)
def _packed_idft_matrix(n: int, pack: int, n_out: int):
    """(pack*n, 2*pack*n_out) float32 block-diagonal IDFT matrix [real | imag]."""
    k = np.arange(n)
    km = np.outer(k, k) % n                          # reduce mod n before scaling
    ang = 2.0 * np.pi * km.astype(np.float64) / n    # exact angles in float64
    cr = np.cos(ang) / n                             # real part of exp(+i*ang) / n
    ci = np.sin(ang) / n                             # imag part of exp(+i*ang) / n
    if n_out > n:                                    # lane-dense output padding
        cr = np.pad(cr, ((0, 0), (0, n_out - n)))
        ci = np.pad(ci, ((0, 0), (0, n_out - n)))
    eye = np.eye(pack)
    w = np.concatenate([np.kron(eye, cr), np.kron(eye, ci)], axis=1)
    return jnp.asarray(w.astype(np.float32))


def _choose_tile_m(rows: int, k_in: int, half: int) -> int:
    """Power-of-two tile (8..2048): >=2 grid steps when possible, VMEM-bounded."""
    t = min(2048, max(8, pl.next_power_of_2(max(1, (rows + 1) // 2))))
    # Keep double-buffered x/out blocks + double-buffered W under ~12 MiB so we
    # stay inside v5e's 16 MiB scoped-VMEM default without an explicit limit.
    budget = 12 * 1024 * 1024
    w_bytes = 2 * (k_in * 2 * half * 4)
    while t > 8 and 2 * t * (k_in + 2 * half) * 4 + w_bytes > budget:
        t //= 2
    return t


def _ifft_kernel(x_ref, w_ref, re_ref, im_ref):
    # x_ref : (TM, K)        f32 -- PACK length-N signals per 128-lane row.
    # w_ref : (K, 2*HALF)    f32 -- block-diagonal IDFT weights, [real | imag].
    # re_ref/im_ref: (TM, HALF)  -- planar outputs; HALF is a multiple of 128,
    #                              so the split and both stores are lane-dense.
    # NOTE: default matmul precision (validated to 1e-4 vs jnp.fft.ifft below);
    # pin a higher precision if larger N / magnitudes require it.
    y = jnp.dot(x_ref[...], w_ref[...], preferred_element_type=jnp.float32)
    half = re_ref.shape[-1]
    re_ref[...] = y[:, :half]
    im_ref[...] = y[:, half:]


@jax.jit
def _ifourier_impl(inp, w):
    orig_shape = inp.shape
    n = int(orig_shape[-1])
    pack, n_out = _packing(n)
    k_in = pack * n
    half = pack * n_out

    x2d = jnp.reshape(inp, (-1, n)).astype(jnp.float32)
    m = x2d.shape[0]

    # Pad only to a multiple of pack (<= pack-1 zero rows; fused into this jit).
    m_pad = _round_up(m, pack)
    if m_pad != m:
        x2d = jnp.pad(x2d, ((0, m_pad - m), (0, 0)))
    rows = m_pad // pack
    xp = jnp.reshape(x2d, (rows, k_in))              # contiguous, free reshape

    tile_m = _choose_tile_m(rows, k_in, half)
    grid = (pl.cdiv(rows, tile_m),)                  # partial last block is masked

    yr, yi = pl.pallas_call(
        _ifft_kernel,
        out_shape=(jax.ShapeDtypeStruct((rows, half), jnp.float32),
                   jax.ShapeDtypeStruct((rows, half), jnp.float32)),
        grid_spec=pltpu.PrefetchScalarGridSpec(
            num_scalar_prefetch=0,
            grid=grid,
            in_specs=[
                pl.BlockSpec((tile_m, k_in), lambda i: (i, 0)),
                # Constant IDFT weights (index_map is (0, 0) every step).
                # TODO(synk): single-buffer / K-tile W for the pack==1 large-N
                # path; at 128x256 f32 (128 KiB) the default double buffer is
                # negligible for the packed small-N case exercised here.
                pl.BlockSpec((k_in, 2 * half), lambda i: (0, 0)),
            ],
            out_specs=[
                pl.BlockSpec((tile_m, half), lambda i: (i, 0)),
                pl.BlockSpec((tile_m, half), lambda i: (i, 0)),
            ],
        ),
        compiler_params=pltpu.CompilerParams(
            dimension_semantics=("parallel",)),
    )(xp, w)

    # Planar -> complex64, fused in this jit (single pass over the output).
    re = jnp.reshape(yr, (m_pad, n_out))[:m, :n]
    im = jnp.reshape(yi, (m_pad, n_out))[:m, :n]
    out = jax.lax.complex(re, im)                    # matches torch.fft.ifft dtype
    return jnp.reshape(out, orig_shape)


def ifourier(inp):
    """ifft(inp) along the last axis; real input -> complex64 output."""
    if jnp.iscomplexobj(inp):
        # TODO(synk): complex input needs a second (imag @ W) matmul; the
        # augmentation pipeline feeds real tensors, so reject rather than
        # silently dropping the imaginary part.
        raise TypeError("ifourier: complex-valued inputs are not supported")
    n = int(inp.shape[-1])
    pack, n_out = _packing(n)
    w = _packed_idft_matrix(n, pack, n_out)          # cached per (n, pack)
    return _ifourier_impl(inp, w)


class IFourier:
    """JAX/Pallas port of the PyTorch IFourier augmentation module."""

    def __init__(self, probability: float = 1.0):
        self.probability = probability

    def __call__(self, inp, key=None):
        if self.probability >= 1.0:
            return ifourier(inp)                     # no RNG draw / host sync
        # Host-side coin flip, matching `if self.probability > torch.rand(1)`.
        if key is not None:
            u = float(jax.random.uniform(key, ()))
        else:
            u = float(np.random.rand())
        if self.probability > u:
            return ifourier(inp)
        # NOTE: miss branch keeps the real dtype, hit branch is complex64 --
        # same behaviour as the PyTorch module (not jit/shape-stable by design).
        return inp

    def __repr__(self):
        return self.__class__.__name__ + '(probability={})'.format(self.probability)


if __name__ == "__main__":
    key = jax.random.PRNGKey(0)
    B, C, H, W = 2, 4, 16, 16
    x = jax.random.normal(key, (B, C, H, W), dtype=jnp.float32)

    aug = IFourier(probability=1.0)
    out = jax.block_until_ready(aug(x))

    # Reference semantics: torch.fft.ifft along the last axis.
    ref = jnp.fft.ifft(x)
    assert out.shape == (B, C, H, W)
    assert jnp.iscomplexobj(out)
    assert float(jnp.max(jnp.abs(out - ref))) < 1e-4

    print("KERNEL_OK")
</pallas_src>

<mosaic_0001>
module attributes {stable_mosaic.version = 11 : i64} {
  func.func @_ifft_kernel(%arg0: i32, %arg1: memref<8x128xf32, #tpu.memory_space<vmem>>, %arg2: memref<128x256xf32, #tpu.memory_space<vmem>>, %arg3: memref<8x128xf32, #tpu.memory_space<vmem>>, %arg4: memref<8x128xf32, #tpu.memory_space<vmem>>) attributes {dimension_semantics = [#tpu.dimension_semantics<parallel>], iteration_bounds = array<i64: 2>, scalar_prefetch = 0 : i64, scratch_operands = 0 : i64, tpu.core_type = #tpu.core_type<tc>, window_params = [{transform_indices = @transform_0, window_bounds = array<i64: 8, 128>}, {pipeline_mode = #tpu.pipeline_mode<synchronous>, transform_indices = @transform_1, window_bounds = array<i64: 128, 256>}, {transform_indices = @transform_2, window_bounds = array<i64: 8, 128>}, {transform_indices = @transform_3, window_bounds = array<i64: 8, 128>}]} {
    %c0 = arith.constant 0 : index
    %c0_0 = arith.constant 0 : index
    %0 = vector.load %arg1[%c0, %c0_0] : memref<8x128xf32, #tpu.memory_space<vmem>>, vector<8x128xf32>
    %c0_1 = arith.constant 0 : index
    %c0_2 = arith.constant 0 : index
    %1 = vector.load %arg2[%c0_1, %c0_2] : memref<128x256xf32, #tpu.memory_space<vmem>>, vector<128x256xf32>
    %cst = arith.constant dense<0.000000e+00> : vector<8x256xf32>
    %2 = tpu.matmul %0, %1, %cst {dimension_numbers = #tpu.dot_dimension_numbers<[1], [0], [0], [1], [0, 0, 1, 1], [], []>} : vector<8x128xf32>, vector<128x256xf32>, vector<8x256xf32> -> vector<8x256xf32>
    %3 = vector.extract_strided_slice %2 {offsets = [0, 0], sizes = [8, 128], strides = [1, 1]} : vector<8x256xf32> to vector<8x128xf32>
    %c0_3 = arith.constant 0 : index
    %c0_4 = arith.constant 0 : index
    %4 = vector.load %arg3[%c0_3, %c0_4] : memref<8x128xf32, #tpu.memory_space<vmem>>, vector<8x128xf32>
    tpu.vector_store %arg3[%c0_3, %c0_4], %3 {strides = array<i32>} : memref<8x128xf32, #tpu.memory_space<vmem>>, vector<8x128xf32>,
    %5 = vector.extract_strided_slice %2 {offsets = [0, 128], sizes = [8, 128], strides = [1, 1]} : vector<8x256xf32> to vector<8x128xf32>
    %c0_5 = arith.constant 0 : index
    %c0_6 = arith.constant 0 : index
    %6 = vector.load %arg4[%c0_5, %c0_6] : memref<8x128xf32, #tpu.memory_space<vmem>>, vector<8x128xf32>
    tpu.vector_store %arg4[%c0_5, %c0_6], %5 {strides = array<i32>} : memref<8x128xf32, #tpu.memory_space<vmem>>, vector<8x128xf32>,
    return
  }
  func.func @transform_0(%arg0: i32) -> (i32, i32) {
    %c0_i32 = arith.constant 0 : i32
    %c0_i32_0 = arith.constant 0 : i32
    return %arg0, %c0_i32 : i32, i32
  }
  func.func @transform_1(%arg0: i32) -> (i32, i32) {
    %c0_i32 = arith.constant 0 : i32
    %c0_i32_0 = arith.constant 0 : i32
    %c0_i32_1 = arith.constant 0 : i32
    return %c0_i32, %c0_i32_0 : i32, i32
  }
  func.func @transform_2(%arg0: i32) -> (i32, i32) {
    %c0_i32 = arith.constant 0 : i32
    %c0_i32_0 = arith.constant 0 : i32
    return %arg0, %c0_i32 : i32, i32
  }
  func.func @transform_3(%arg0: i32) -> (i32, i32) {
    %c0_i32 = arith.constant 0 : i32
    %c0_i32_0 = arith.constant 0 : i32
    return %arg0, %c0_i32 : i32, i32
  }
}

</mosaic_0001>

<bundles_post_ra>
// kernel: custom-call
= control target key start
LH: loop header
LB: loop body
LE: loop exit
PB: predicated region body
PF: predicated region fallthrough
CT: control target
= control target key end

     0   :  { %s126_s0 = inlined_call_operand.vmem [shape: f32[2,4,16,16], index: 0, kind: input, shape index: {}]   ;;  %s127_s1 = inlined_call_operand.vmem [shape: f32[2,4,16,16], index: 1, kind: input, shape index: {}]   ;;  %s128_s2 = inlined_call_operand.hbm [shape: c64[2,4,16,16], index: 2, kind: output, shape index: {}]  }
   0x1   :  { %s87_s11 = scalar_lea.hbm %s128_s2, 2048 }
   0x2   :  { %4 = vsyncpa [#allocation0], 0  ;;  %s5_s14 = sshll.u32 %s126_s0, 4  ;;  %s6_s14 = int_to_ptr.vmem [resolvable:$true] %s5_s14 }
   0x3   :  { %s18_s15 = scalar_lea.vmem %s6_s14, 2048  ;;  %p23_p1 = scmp.lt.s32.totalorder %s6_s14, %s6_s14 }
   0x4   :  { %p19_p0 = scmp.ne.s32.totalorder %s6_s14, %s18_s15  ;;  %p24_p2 = scmp.lt.s32.totalorder %s18_s15, %s18_s15 }
   0x6   :  { %p25_p3 = por %p24_p2, %p23_p1 }
   0x8   :  { %p26_p4 = pnand %p25_p3, %p19_p0 }
   0xa   :  { %29 = shalt.err (!%p26_p4)  }
   0xb   :  { %p31_p5 = scmp.ne.s32.totalorder %s128_s2, %s87_s11  ;;  %s32_s0 = scalar_lea.hbm %s128_s2, 4096 }
   0xc   :  { %p33_p6 = scmp.lt.u32.totalorder %s32_s0, %s87_s11  ;;  %p34_p7 = scmp.lt.u32.totalorder %s87_s11, %s128_s2 }
   0xe   :  { %p35_p8 = por %p34_p7, %p33_p6 }
  0x10   :  { %p36_p9 = pnand %p35_p8, %p31_p5 }
  0x12   :  { %39 = shalt.err (!%p36_p9)  }
  0x13   :  { %8 = dma.vmem_to_hbm [thread:$0]  %s6_s14, 2048, %s128_s2, [#allocation0] }
  0x14   :  { %65 = dma.done.wait [#allocation0], 2048  }
  0x15   :  { %66 = vsyncadd [#allocation0], 4294965248 }
  0x16   :  { %10 = vsyncpa [#allocation0], 1 }
  0x17   :  { %11 = vsyncpa [#allocation1], 0  ;;  %s12_s28 = sshll.u32 %s127_s1, 4  ;;  %s13_s28 = int_to_ptr.vmem [resolvable:$true] %s12_s28 }
  0x18   :  { %s40_s29 = scalar_lea.vmem %s13_s28, 2048  ;;  %p45_p11 = scmp.lt.s32.totalorder %s13_s28, %s13_s28 }
  0x19   :  { %p41_p10 = scmp.ne.s32.totalorder %s13_s28, %s40_s29  ;;  %p46_p12 = scmp.lt.s32.totalorder %s40_s29, %s40_s29 }
  0x1b   :  { %p47_p13 = por %p46_p12, %p45_p11 }
  0x1d   :  { %p48_p0 = pnand %p47_p13, %p41_p10 }
  0x1f   :  { %51 = shalt.err (!%p48_p0)  }
  0x20   :  { %p53_p1 = scmp.ne.s32.totalorder %s87_s11, %s32_s0  ;;  %p56_p2 = scmp.lt.u32.totalorder %s32_s0, %s32_s0 }
  0x22   :  { %p57_p3 = por %p56_p2, %p34_p7 }
  0x24   :  { %p59_p4 = por %p57_p3, %p33_p6 }
  0x26   :  { %p60_p5 = pnand %p59_p4, %p53_p1 }
  0x28   :  { %63 = shalt.err (!%p60_p5)  }
  0x29   :  { %15 = dma.vmem_to_hbm [thread:$0]  %s13_s28, 2048, %s87_s11, [#allocation1] }
  0x2a   :  { %67 = dma.done.wait [#allocation1], 2048  }
  0x2b   :  { %68 = vsyncadd [#allocation1], 4294965248 }
  0x2c   :  { %17 = vsyncpa [#allocation1], 1 }

// kernel: _ifourier_impl.1
= control target key start
LH: loop header
LB: loop body
LE: loop exit
PB: predicated region body
PF: predicated region fallthrough
CT: control target
= control target key end

     0   :  { %9 = vsyncpa [#allocation3], 0  ;;  %s524_s12 = smov 0   ;;  %s583_s0 = inlined_call_operand.vmem [shape: f32[16,128], index: 0, kind: input, shape index: {}]   ;;  %s584_s1 = inlined_call_operand.hbm [shape: f32[128,256], index: 1, kind: input, shape index: {}]   ;;  %s585_s2 = inlined_call_operand.vmem [shape: f32[16,128], index: 2, kind: output, shape index: {0}]   ;;  %s586_s3 = inlined_call_operand.vmem [shape: f32[16,128], index: 3, kind: output, shape index: {1}]  }
   0x1 LB: > { %s530_s13 = sadd.s32 4294967295, %s498_s12   ;;  %p396_p0 = scmp.ge.s32.totalorder %s498_s12, 1  ;;  %s498_s12 = sphi %s524_s12, %s15_s12  }
   0x2   : > { %p119_p1 = scmp.lt.s32.totalorder %s498_s12, 3  ;;  %s500_s14 = smov [#allocation2]  }
   0x3   : > { %s131_s15 = sshll.u32 %s500_s14, 4  ;;  %p587_p3 = scmp.eq.s32.totalorder %s530_s13, 0  ;;  %s132_s15 = int_to_ptr.vmem [resolvable:$true] %s131_s15 }
   0x4   : > { %p534_p2 = pnand %p396_p0, %p119_p1  ;;  %s460_s20 = scalar_lea.hbm %s584_s1, 4096 }
   0x5   : > { %p461_p6 = scmp.ne.s32.totalorder %s584_s1, %s460_s20  ;;  %p467_p10 = scmp.lt.u32.totalorder %s460_s20, %s584_s1 }
   0x6   : > { %s589_s16 = scalar_select %p534_p2, 1, 0 }
   0x7   : > { %p442_p4 = pneg %p534_p2 }
   0x9   : > { %p543_p5 = pnand %p587_p3, %p442_p4 }
   0xb   : > { %p462_p7 = pneg %p543_p5 }
   0xd   : > { %p463_p8 = pnand %p462_p7, %p461_p6 }
   0xf   : > { %p464_p9 = pneg %p463_p8 }
  0x11   : > { %p469_p11 = pnand %p467_p10, %p464_p9 }
  0x13   : > { %472 = shalt.err (!%p469_p11)
}
  0x14   : > { %s473_s25 = scalar_lea.vmem %s132_s15, 4096  ;;  %p481_p1 = scmp.lt.s32.totalorder %s132_s15, %s132_s15 }
  0x15   : > { %p474_p12 = scmp.ne.s32.totalorder %s132_s15, %s473_s25  ;;  %p482_p4 = scmp.lt.s32.totalorder %s473_s25, %s473_s25 }
  0x17   : > { %p476_p13 = pnand %p474_p12, %p462_p7  ;;  %p483_p3 = por %p482_p4, %p481_p1 }
  0x19   : > { %p477_p0 = pneg %p476_p13 }
  0x1b   : > { %p484_p2 = pnand %p483_p3, %p477_p0 }
  0x1d   : > { %487 = shalt.err (!%p484_p2)
}
  0x1e   : > { %s501_s26 = smov 256   ;;  %s502_s27 = smov 16  }
  0x1f   : > { %445 = dma.hbm_to_vmem [thread:$0]  (!%p543_p5), %s584_s1, 4096, %s132_s15, [#allocation3], %s501_s26, %s501_s26, %s502_s27  }
  0x20   : > { %p591_p6 = scmp.ne.s32.totalorder %s589_s16, 0 }
  0x21   : > { %p592_p8 = scmp.eq.s32.totalorder (!%p591_p6), %s530_s13, 0 }
  0x22   : > { %154 = sbr.rel (%p591_p6) target bundleno = 291 (0x123), region = 28 }
  0x29   : > { %493 = dma.done.wait (%p592_p8), [#allocation3], 4096   ;;  %p593_p7 = pmov %p592_p8 }
  0x2a   : > { %v503_v0 = vmov 0.0   ;;  %v194_v1 = vld [vmem:[#allocation2 + $0x8] sm:$0xff]  ;;  %v196_v2 = vld [vmem:[#allocation2 + $0x18] sm:$0xff]  ;;  %v193_v3 = vld [vmem:[#allocation2] sm:$0xff]  ;;  %p180_p2 = scmp.lt.s32.totalorder %s530_s13, 1 }
  0x2b   : > { %495 = vsyncadd (%p593_p7), [#allocation3], 4294963200  ;;  %289 = vmatprep.mubr.f32.mxu0 %v503_v0  ;;  %v406_v4 = vpack.c.bf16 %v196_v2, %v194_v1  ;;  %v195_v5 = vld [vmem:[#allocation2 + $0x10] sm:$0xff]  ;;  %v198_v6 = vld [vmem:[#allocation2 + $0x28] sm:$0xff] }
  0x2c   : > { %v200_v7 = vld [vmem:[#allocation2 + $0x38] sm:$0xff]  ;;  %v408_v8 = vpack.c.bf16 %v195_v5, %v193_v3  ;;  %v197_v10 = vld [vmem:[#allocation2 + $0x20] sm:$0xff]  ;;  %v199_v11 = vld [vmem:[#allocation2 + $0x30] sm:$0xff]  ;;  %s595_s13 = smov (!%p180_p2, %s530_s13), 1 }
  0x2d   : > { %v410_v9 = vpack.c.bf16 %v200_v7, %v198_v6  ;;  %v202_v12 = vld [vmem:[#allocation2 + $0x48] sm:$0xff]  ;;  %407 = vmatprep.subr.bf16.mxu0 %v406_v4  ;;  %v204_v13 = vld [vmem:[#allocation2 + $0x58] sm:$0xff]  ;;  %v412_v14 = vpack.c.bf16 %v199_v11, %v197_v10  ;;  %v201_v16 = vld [vmem:[#allocation2 + $0x40] sm:$0xff]  ;;  %s401_s30 = sshll.u32 %s595_s13, 3 }
  0x2e   : > { %409 = vmatpush1.bf16.msra.mxu0 %v408_v8  ;;  %v414_v15 = vpack.c.bf16 %v204_v13, %v202_v12  ;;  %v203_v17 = vld [vmem:[#allocation2 + $0x50] sm:$0xff]  ;;  %v206_v18 = vld [vmem:[#allocation2 + $0x68] sm:$0xff]  ;;  %v208_v19 = vld [vmem:[#allocation2 + $0x78] sm:$0xff]  ;;  %s183_s6 = scalar_lea.vmem %s583_s0, %s401_s30  ;;  %s187_s9 = scalar_lea.vmem %s585_s2, %s401_s30 }
  0x2f   : > { %411 = vmatprep.subr.bf16.mxu0 %v410_v9  ;;  %v416_v20 = vpack.c.bf16 %v203_v17, %v201_v16  ;;  %v418_v21 = vpack.c.bf16 %v208_v19, %v206_v18  ;;  %v205_v22 = vld [vmem:[#allocation2 + $0x60] sm:$0xff]  ;;  %v207_v23 = vld [vmem:[#allocation2 + $0x70] sm:$0xff]  ;;  %v210_v24 = vld [vmem:[#allocation2 + $0x88] sm:$0xff]  ;;  %s191_s14 = scalar_lea.vmem %s586_s3, %s401_s30 }
  0x30   : > { %v212_v25 = vld [vmem:[#allocation2 + $0x98] sm:$0xff]  ;;  %v420_v26 = vpack.c.bf16 %v207_v23, %v205_v22  ;;  %v209_v28 = vld [vmem:[#allocation2 + $0x80] sm:$0xff]  ;;  %v211_v29 = vld [vmem:[#allocation2 + $0x90] sm:$0xff] }
  0x31   : > { %v422_v27 = vpack.c.bf16 %v212_v25, %v210_v24  ;;  %v214_v30 = vld [vmem:[#allocation2 + $0xa8] sm:$0xff]  ;;  %v216_v31 = vld [vmem:[#allocation2 + $0xb8] sm:$0xff]  ;;  %v424_v32 = vpack.c.bf16 %v211_v29, %v209_v28  ;;  %v213_v34 = vld [vmem:[#allocation2 + $0xa0] sm:$0xff] }
  0x32   : > { %413 = vmatpush1.bf16.msra.mxu0 %v412_v14  ;;  %v426_v33 = vpack.c.bf16 %v216_v31, %v214_v30  ;;  %v215_v35 = vld [vmem:[#allocation2 + $0xb0] sm:$0xff]  ;;  %v218_v36 = vld [vmem:[#allocation2 + $0xc8] sm:$0xff]  ;;  %v220_v37 = vld [vmem:[#allocation2 + $0xd8] sm:$0xff] }
  0x33   : > { %415 = vmatprep.subr.bf16.mxu0 %v414_v15  ;;  %v428_v38 = vpack.c.bf16 %v215_v35, %v213_v34  ;;  %v430_v39 = vpack.c.bf16 %v220_v37, %v218_v36  ;;  %v217_v40 = vld [vmem:[#allocation2 + $0xc0] sm:$0xff]  ;;  %v219_v41 = vld [vmem:[#allocation2 + $0xd0] sm:$0xff]  ;;  %v222_v42 = vld [vmem:[#allocation2 + $0xe8] sm:$0xff] }
  0x34   : > { %v224_v43 = vld [vmem:[#allocation2 + $0xf8] sm:$0xff]  ;;  %v432_v44 = vpack.c.bf16 %v219_v41, %v217_v40  ;;  %v221_v46 = vld [vmem:[#allocation2 + $0xe0] sm:$0xff]  ;;  %v223_v47 = vld [vmem:[#allocation2 + $0xf0] sm:$0xff] }
  0x35   : > { %v434_v45 = vpack.c.bf16 %v224_v43, %v222_v42  ;;  %v436_v48 = vpack.c.bf16 %v223_v47, %v221_v46  ;;  %v192_v49 = vld [vmem:[%s183_s6] sm:$0xff] }
  0x36   : > { %417 = vmatpush1.bf16.msra.mxu0 %v416_v20 }
  0x37   : > { %419 = vmatprep.subr.bf16.mxu0 %v418_v21 }
  0x3a   : > { %421 = vmatpush1.bf16.msra.mxu0 %v420_v26 }
  0x3b   : > { %423 = vmatprep.subr.bf16.mxu0 %v422_v27 }
  0x3e   : > { %425 = vmatpush1.bf16.msra.mxu0 %v424_v32 }
  0x3f   : > { %427 = vmatprep.subr.bf16.mxu0 %v426_v33 }
  0x42   : > { %429 = vmatpush1.bf16.msra.mxu0 %v428_v38 }
  0x43   : > { %431 = vmatprep.subr.bf16.mxu0 %v430_v39 }
  0x46   : > { %433 = vmatpush1.bf16.msra.mxu0 %v432_v44 }
  0x47   : > { %435 = vmatprep.subr.bf16.mxu0 %v434_v45 }
  0x4a   : > { %437 = vmatpush1.bf16.msra.mxu0 %v436_v48 }
  0x4d   : > { %290 = vmatmul.mubr.f32.vlgmr.msra.gmra.mrb[0].mxu0 %v192_v49 }
 0x120   : > { %v291_v50 = vpop.f32.mrb[0].mxu0 }
 0x121   : > { %296 = vst [vmem:[%s187_s9] sm:$0xff] %v291_v50  ;;  %v293_v51 = vpop.f32.mrb[1].mxu0 }
 0x122   : > { %297 = vst [vmem:[%s191_s14] sm:$0xff] %v293_v51 }
 0x123 PF: > { %s15_s12 = sadd.s32 1, %s498_s12  }
 0x124   : > { %p12_p3 = scmp.ge.s32.totalorder %s15_s12, 4  }
 0x126   :  { %14 = sbr.rel (!%p12_p3) target bundleno = 1 (0x1), region = 75 }
 0x12d   :  { %331 = vsyncpa [#allocation3], 1 }
 0x12e   :  { %333 = vsyncpa [#allocation3 + $0x1], 1 }

</bundles_post_ra>
